<compile_context>
chip_gen: v6e
topology: v6e:2x2x1
jax: 0.10.0
libtpu: 0.0.40
codegen_flags: <defaults>
</compile_context>

<pallas_src>
import jax
import jax.numpy as jnp
from jax.experimental import pallas as pl
from jax.experimental.pallas import tpu as pltpu

# --- model hyper-parameters (from the PyTorch module) -----------------------
EMBEDDING_SIZE = 10
HIDDEN_SIZE = 8
INPUT_SIZE = 4          # vocabulary size for the Embedding
NUM_CLASS = 4
NUM_LAYERS = 2
CLASS_PAD = 128         # pad FC output to a full 128-lane vreg -> dense (unmasked) store


def _rnn_kernel(xp_ref, w_hh0_ref, w_cat1_ref, b1_ref, w_fc_ref, b_fc_ref,
                out_ref, hcat, h1_acc):
    """2-layer tanh RNN recurrence + fused FC head, all resident in VMEM.

    xp_ref : (B, S, H)   precomputed emb[idx] @ W_ih0 + (b_ih0 + b_hh0)
    w_hh0  : (H, H)      layer-0 recurrent weight (pre-transposed)
    w_cat1 : (2H, H)     [W_ih1 ; W_hh1] stacked (pre-transposed)
    b1     : (1, H)      b_ih1 + b_hh1
    w_fc   : (H, CLASS_PAD)  zero-padded FC weight
    b_fc   : (1, CLASS_PAD)  zero-padded FC bias
    out    : (B*S, CLASS_PAD)
    hcat   : VMEM scratch (B, 2H)  -- concatenated state [h0 | h1]
    h1_acc : VMEM scratch (B, S, H) -- top-layer outputs for the hoisted FC head
    """
    batch, seq, hidden = xp_ref.shape

    w_hh0 = w_hh0_ref[...]
    w_cat1 = w_cat1_ref[...]
    b1 = b1_ref[...]

    # h(0) = 0 for both layers.
    hcat[...] = jnp.zeros_like(hcat)
    h0 = jnp.zeros((batch, hidden), jnp.float32)

    # Serial time loop: only the two recurrent matmuls remain on the critical path.
    for t in range(seq):
        # layer 0: h0 = tanh(x_proj_t + h0 @ W_hh0)   (input proj + biases prefolded)
        h0 = jnp.tanh(xp_ref[:, t, :] +
                      jnp.dot(h0, w_hh0, preferred_element_type=jnp.float32))
        hcat[:, 0:hidden] = h0
        # layer 1: single fused MXU push  [h0_new | h1_old] @ [W_ih1 ; W_hh1] + b1
        h1 = jnp.tanh(jnp.dot(hcat[...], w_cat1,
                              preferred_element_type=jnp.float32) + b1)
        hcat[:, hidden:2 * hidden] = h1
        h1_acc[:, t, :] = h1

    # FC head hoisted out of the loop: one (B*S, H) @ (H, 128) matmul and a single
    # lane-dense store (no per-step masked vst.msk on a 4-lane output).
    h_flat = h1_acc[...].reshape(batch * seq, hidden)
    out_ref[...] = (jnp.dot(h_flat, w_fc_ref[...],
                            preferred_element_type=jnp.float32) + b_fc_ref[...])


@jax.jit
def model_forward(idx, params):
    """idx: (B, S) int32 token indices. Returns (B*S, NUM_CLASS) float32."""
    batch, seq = idx.shape

    # --- plain-JAX prep: everything without a sequential dependency -----------
    # Embedding gather + layer-0 input projection for ALL (B*S) tokens at once,
    # with both layer-0 biases folded in.
    x_proj = (params["emb"][idx] @ params["w_ih0"]
              + params["b_ih0"] + params["b_hh0"])                       # (B, S, H)
    # Fused layer-1 weight / pre-summed bias.
    w_cat1 = jnp.concatenate([params["w_ih1"], params["w_hh1"]], axis=0)  # (2H, H)
    b1 = params["b_ih1"] + params["b_hh1"]                                # (1, H)
    # Lane-pad the FC head so the kernel's output store is dense (128 lanes).
    w_fc_pad = jnp.zeros((HIDDEN_SIZE, CLASS_PAD), jnp.float32)
    w_fc_pad = w_fc_pad.at[:, :NUM_CLASS].set(params["w_fc"])
    b_fc_pad = jnp.zeros((1, CLASS_PAD), jnp.float32)
    b_fc_pad = b_fc_pad.at[:, :NUM_CLASS].set(params["b_fc"])

    vmem = pl.BlockSpec(memory_space=pltpu.MemorySpace.VMEM)
    out = pl.pallas_call(
        _rnn_kernel,
        out_shape=jax.ShapeDtypeStruct((batch * seq, CLASS_PAD), jnp.float32),
        in_specs=[vmem] * 6,
        out_specs=vmem,
        scratch_shapes=[
            pltpu.VMEM((batch, 2 * HIDDEN_SIZE), jnp.float32),       # [h0 | h1] state
            pltpu.VMEM((batch, seq, HIDDEN_SIZE), jnp.float32),      # per-step h1
        ],
        # TODO(synk): once batch is non-trivial, add a "parallel" batch grid axis
        # (tile multiple of 8 sublanes) to pipeline DMAs / shard across v7x cores.
    )(x_proj, params["w_hh0"], w_cat1, b1, w_fc_pad, b_fc_pad)

    return out[:, :NUM_CLASS]                                            # (B*S, C)


def make_params(key):
    """Deterministic synthetic parameters with PyTorch shapes (pre-transposed)."""
    ks = jax.random.split(key, 11)
    s = 1.0 / jnp.sqrt(HIDDEN_SIZE)
    u = lambda k, shape: jax.random.uniform(k, shape, jnp.float32, -s, s)
    return {
        # nn.Embedding(4, 10): weight (4, 10), init ~ N(0, 1)
        "emb": jax.random.normal(ks[0], (INPUT_SIZE, EMBEDDING_SIZE), jnp.float32),
        # nn.RNN layer 0: weight_ih_l0 (H, E) -> stored transposed (E, H)
        "w_ih0": u(ks[1], (EMBEDDING_SIZE, HIDDEN_SIZE)),
        "w_hh0": u(ks[2], (HIDDEN_SIZE, HIDDEN_SIZE)),
        "b_ih0": u(ks[3], (1, HIDDEN_SIZE)),
        "b_hh0": u(ks[4], (1, HIDDEN_SIZE)),
        # nn.RNN layer 1
        "w_ih1": u(ks[5], (HIDDEN_SIZE, HIDDEN_SIZE)),
        "w_hh1": u(ks[6], (HIDDEN_SIZE, HIDDEN_SIZE)),
        "b_ih1": u(ks[7], (1, HIDDEN_SIZE)),
        "b_hh1": u(ks[8], (1, HIDDEN_SIZE)),
        # nn.Linear(8, 4): weight (4, 8) -> stored transposed (8, 4)
        "w_fc": u(ks[9], (HIDDEN_SIZE, NUM_CLASS)),
        "b_fc": u(ks[10], (1, NUM_CLASS)),
    }


def reference_forward(idx, p):
    """Pure-JAX reference matching PyTorch semantics (correctness check)."""
    x = p["emb"][idx]                                   # (B, S, E)
    batch, seq, _ = x.shape
    h0 = jnp.zeros((batch, HIDDEN_SIZE), jnp.float32)
    h1 = jnp.zeros((batch, HIDDEN_SIZE), jnp.float32)
    outs = []
    for t in range(seq):
        x_t = x[:, t, :]
        h0 = jnp.tanh(x_t @ p["w_ih0"] + p["b_ih0"] + h0 @ p["w_hh0"] + p["b_hh0"])
        h1 = jnp.tanh(h0 @ p["w_ih1"] + p["b_ih1"] + h1 @ p["w_hh1"] + p["b_hh1"])
        outs.append(h1 @ p["w_fc"] + p["b_fc"])
    y = jnp.stack(outs, axis=1)                         # (B, S, C)
    return y.reshape(-1, NUM_CLASS)


if __name__ == "__main__":
    key = jax.random.PRNGKey(0)
    k_idx, k_params = jax.random.split(key)

    batch, seq = 2, 8
    idx = jax.random.randint(k_idx, (batch, seq), 0, INPUT_SIZE, dtype=jnp.int32)
    params = make_params(k_params)

    out = model_forward(idx, params)
    out = jax.block_until_ready(out)

    ref = reference_forward(idx, params)
    assert out.shape == (batch * seq, NUM_CLASS), out.shape
    assert jnp.allclose(out, ref, atol=1e-5, rtol=1e-5), "mismatch vs JAX reference"

    print("KERNEL_OK")
</pallas_src>

<mosaic_0001>
module attributes {stable_mosaic.version = 11 : i64} {
  func.func @_rnn_kernel(%arg0: memref<2x8x8xf32, #tpu.memory_space<vmem>>, %arg1: memref<8x8xf32, #tpu.memory_space<vmem>>, %arg2: memref<16x8xf32, #tpu.memory_space<vmem>>, %arg3: memref<1x8xf32, #tpu.memory_space<vmem>>, %arg4: memref<8x128xf32, #tpu.memory_space<vmem>>, %arg5: memref<1x128xf32, #tpu.memory_space<vmem>>, %arg6: memref<16x128xf32, #tpu.memory_space<vmem>>, %arg7: memref<2x16xf32, #tpu.memory_space<vmem>>, %arg8: memref<2x8x8xf32, #tpu.memory_space<vmem>>) attributes {dimension_semantics = [], scalar_prefetch = 0 : i64, scratch_operands = 2 : i64, tpu.core_type = #tpu.core_type<tc>} {
    %c0 = arith.constant 0 : index
    %c0_0 = arith.constant 0 : index
    %0 = vector.load %arg1[%c0, %c0_0] : memref<8x8xf32, #tpu.memory_space<vmem>>, vector<8x8xf32>
    %c0_1 = arith.constant 0 : index
    %c0_2 = arith.constant 0 : index
    %1 = vector.load %arg2[%c0_1, %c0_2] : memref<16x8xf32, #tpu.memory_space<vmem>>, vector<16x8xf32>
    %c0_3 = arith.constant 0 : index
    %c0_4 = arith.constant 0 : index
    %2 = vector.load %arg3[%c0_3, %c0_4] : memref<1x8xf32, #tpu.memory_space<vmem>>, vector<1x8xf32>
    %cst = arith.constant 0.000000e+00 : f32
    %3 = vector.broadcast %cst : f32 to vector<2x16xf32>
    %c0_5 = arith.constant 0 : index
    %c0_6 = arith.constant 0 : index
    %4 = vector.load %arg7[%c0_5, %c0_6] : memref<2x16xf32, #tpu.memory_space<vmem>>, vector<2x16xf32>
    tpu.vector_store %arg7[%c0_5, %c0_6], %3 {strides = array<i32>} : memref<2x16xf32, #tpu.memory_space<vmem>>, vector<2x16xf32>,
    %cst_7 = arith.constant 0.000000e+00 : f32
    %5 = vector.broadcast %cst_7 : f32 to vector<2x8xf32>
    %c0_8 = arith.constant 0 : index
    %c0_9 = arith.constant 0 : index
    %c0_10 = arith.constant 0 : index
    %6 = vector.load %arg0[%c0_8, %c0_9, %c0_10] : memref<2x8x8xf32, #tpu.memory_space<vmem>>, vector<2x1x8xf32>
    %7 = vector.shape_cast %6 : vector<2x1x8xf32> to vector<2x8xf32>
    %cst_11 = arith.constant dense<0.000000e+00> : vector<2x8xf32>
    %8 = tpu.matmul %5, %0, %cst_11 {dimension_numbers = #tpu.dot_dimension_numbers<[1], [0], [0], [1], [0, 0, 1, 1], [], []>} : vector<2x8xf32>, vector<8x8xf32>, vector<2x8xf32> -> vector<2x8xf32>
    %9 = arith.addf %7, %8 : vector<2x8xf32>
    %10 = math.tanh %9 : vector<2x8xf32>
    %c0_12 = arith.constant 0 : index
    %c0_13 = arith.constant 0 : index
    %11 = vector.load %arg7[%c0_12, %c0_13] : memref<2x16xf32, #tpu.memory_space<vmem>>, vector<2x8xf32>
    tpu.vector_store %arg7[%c0_12, %c0_13], %10 {strides = array<i32>} : memref<2x16xf32, #tpu.memory_space<vmem>>, vector<2x8xf32>,
    %c0_14 = arith.constant 0 : index
    %c0_15 = arith.constant 0 : index
    %12 = vector.load %arg7[%c0_14, %c0_15] : memref<2x16xf32, #tpu.memory_space<vmem>>, vector<2x16xf32>
    %cst_16 = arith.constant dense<0.000000e+00> : vector<2x8xf32>
    %13 = tpu.matmul %12, %1, %cst_16 {dimension_numbers = #tpu.dot_dimension_numbers<[1], [0], [0], [1], [0, 0, 1, 1], [], []>} : vector<2x16xf32>, vector<16x8xf32>, vector<2x8xf32> -> vector<2x8xf32>
    %14 = vector.broadcast %2 : vector<1x8xf32> to vector<2x8xf32>
    %15 = arith.addf %13, %14 : vector<2x8xf32>
    %16 = math.tanh %15 : vector<2x8xf32>
    %c0_17 = arith.constant 0 : index
    %c8 = arith.constant 8 : index
    %17 = vector.load %arg7[%c0_17, %c8] : memref<2x16xf32, #tpu.memory_space<vmem>>, vector<2x8xf32>
    tpu.vector_store %arg7[%c0_17, %c8], %16 {strides = array<i32>} : memref<2x16xf32, #tpu.memory_space<vmem>>, vector<2x8xf32>,
    %c0_18 = arith.constant 0 : index
    %c0_19 = arith.constant 0 : index
    %c0_20 = arith.constant 0 : index
    %18 = vector.load %arg8[%c0_18, %c0_19, %c0_20] : memref<2x8x8xf32, #tpu.memory_space<vmem>>, vector<2x1x8xf32>
    %19 = vector.shape_cast %18 : vector<2x1x8xf32> to vector<2x8xf32>
    %20 = vector.shape_cast %16 : vector<2x8xf32> to vector<2x1x8xf32>
    tpu.vector_store %arg8[%c0_18, %c0_19, %c0_20], %20 {strides = array<i32>} : memref<2x8x8xf32, #tpu.memory_space<vmem>>, vector<2x1x8xf32>,
    %c0_21 = arith.constant 0 : index
    %c1 = arith.constant 1 : index
    %c0_22 = arith.constant 0 : index
    %21 = vector.load %arg0[%c0_21, %c1, %c0_22] : memref<2x8x8xf32, #tpu.memory_space<vmem>>, vector<2x1x8xf32>
    %22 = vector.shape_cast %21 : vector<2x1x8xf32> to vector<2x8xf32>
    %cst_23 = arith.constant dense<0.000000e+00> : vector<2x8xf32>
    %23 = tpu.matmul %10, %0, %cst_23 {dimension_numbers = #tpu.dot_dimension_numbers<[1], [0], [0], [1], [0, 0, 1, 1], [], []>} : vector<2x8xf32>, vector<8x8xf32>, vector<2x8xf32> -> vector<2x8xf32>
    %24 = arith.addf %22, %23 : vector<2x8xf32>
    %25 = math.tanh %24 : vector<2x8xf32>
    %c0_24 = arith.constant 0 : index
    %c0_25 = arith.constant 0 : index
    %26 = vector.load %arg7[%c0_24, %c0_25] : memref<2x16xf32, #tpu.memory_space<vmem>>, vector<2x8xf32>
    tpu.vector_store %arg7[%c0_24, %c0_25], %25 {strides = array<i32>} : memref<2x16xf32, #tpu.memory_space<vmem>>, vector<2x8xf32>,
    %c0_26 = arith.constant 0 : index
    %c0_27 = arith.constant 0 : index
    %27 = vector.load %arg7[%c0_26, %c0_27] : memref<2x16xf32, #tpu.memory_space<vmem>>, vector<2x16xf32>
    %cst_28 = arith.constant dense<0.000000e+00> : vector<2x8xf32>
    %28 = tpu.matmul %27, %1, %cst_28 {dimension_numbers = #tpu.dot_dimension_numbers<[1], [0], [0], [1], [0, 0, 1, 1], [], []>} : vector<2x16xf32>, vector<16x8xf32>, vector<2x8xf32> -> vector<2x8xf32>
    %29 = vector.broadcast %2 : vector<1x8xf32> to vector<2x8xf32>
    %30 = arith.addf %28, %29 : vector<2x8xf32>
    %31 = math.tanh %30 : vector<2x8xf32>
    %c0_29 = arith.constant 0 : index
    %c8_30 = arith.constant 8 : index
    %32 = vector.load %arg7[%c0_29, %c8_30] : memref<2x16xf32, #tpu.memory_space<vmem>>, vector<2x8xf32>
    tpu.vector_store %arg7[%c0_29, %c8_30], %31 {strides = array<i32>} : memref<2x16xf32, #tpu.memory_space<vmem>>, vector<2x8xf32>,
    %c0_31 = arith.constant 0 : index
    %c1_32 = arith.constant 1 : index
    %c0_33 = arith.constant 0 : index
    %33 = vector.load %arg8[%c0_31, %c1_32, %c0_33] : memref<2x8x8xf32, #tpu.memory_space<vmem>>, vector<2x1x8xf32>
    %34 = vector.shape_cast %33 : vector<2x1x8xf32> to vector<2x8xf32>
    %35 = vector.shape_cast %31 : vector<2x8xf32> to vector<2x1x8xf32>
    tpu.vector_store %arg8[%c0_31, %c1_32, %c0_33], %35 {strides = array<i32>} : memref<2x8x8xf32, #tpu.memory_space<vmem>>, vector<2x1x8xf32>,
    %c0_34 = arith.constant 0 : index
    %c2 = arith.constant 2 : index
    %c0_35 = arith.constant 0 : index
    %36 = vector.load %arg0[%c0_34, %c2, %c0_35] : memref<2x8x8xf32, #tpu.memory_space<vmem>>, vector<2x1x8xf32>
    %37 = vector.shape_cast %36 : vector<2x1x8xf32> to vector<2x8xf32>
    %cst_36 = arith.constant dense<0.000000e+00> : vector<2x8xf32>
    %38 = tpu.matmul %25, %0, %cst_36 {dimension_numbers = #tpu.dot_dimension_numbers<[1], [0], [0], [1], [0, 0, 1, 1], [], []>} : vector<2x8xf32>, vector<8x8xf32>, vector<2x8xf32> -> vector<2x8xf32>
    %39 = arith.addf %37, %38 : vector<2x8xf32>
    %40 = math.tanh %39 : vector<2x8xf32>
    %c0_37 = arith.constant 0 : index
    %c0_38 = arith.constant 0 : index
    %41 = vector.load %arg7[%c0_37, %c0_38] : memref<2x16xf32, #tpu.memory_space<vmem>>, vector<2x8xf32>
    tpu.vector_store %arg7[%c0_37, %c0_38], %40 {strides = array<i32>} : memref<2x16xf32, #tpu.memory_space<vmem>>, vector<2x8xf32>,
    %c0_39 = arith.constant 0 : index
    %c0_40 = arith.constant 0 : index
    %42 = vector.load %arg7[%c0_39, %c0_40] : memref<2x16xf32, #tpu.memory_space<vmem>>, vector<2x16xf32>
    %cst_41 = arith.constant dense<0.000000e+00> : vector<2x8xf32>
    %43 = tpu.matmul %42, %1, %cst_41 {dimension_numbers = #tpu.dot_dimension_numbers<[1], [0], [0], [1], [0, 0, 1, 1], [], []>} : vector<2x16xf32>, vector<16x8xf32>, vector<2x8xf32> -> vector<2x8xf32>
    %44 = vector.broadcast %2 : vector<1x8xf32> to vector<2x8xf32>
    %45 = arith.addf %43, %44 : vector<2x8xf32>
    %46 = math.tanh %45 : vector<2x8xf32>
    %c0_42 = arith.constant 0 : index
    %c8_43 = arith.constant 8 : index
    %47 = vector.load %arg7[%c0_42, %c8_43] : memref<2x16xf32, #tpu.memory_space<vmem>>, vector<2x8xf32>
    tpu.vector_store %arg7[%c0_42, %c8_43], %46 {strides = array<i32>} : memref<2x16xf32, #tpu.memory_space<vmem>>, vector<2x8xf32>,
    %c0_44 = arith.constant 0 : index
    %c2_45 = arith.constant 2 : index
    %c0_46 = arith.constant 0 : index
    %48 = vector.load %arg8[%c0_44, %c2_45, %c0_46] : memref<2x8x8xf32, #tpu.memory_space<vmem>>, vector<2x1x8xf32>
    %49 = vector.shape_cast %48 : vector<2x1x8xf32> to vector<2x8xf32>
    %50 = vector.shape_cast %46 : vector<2x8xf32> to vector<2x1x8xf32>
    tpu.vector_store %arg8[%c0_44, %c2_45, %c0_46], %50 {strides = array<i32>} : memref<2x8x8xf32, #tpu.memory_space<vmem>>, vector<2x1x8xf32>,
    %c0_47 = arith.constant 0 : index
    %c3 = arith.constant 3 : index
    %c0_48 = arith.constant 0 : index
    %51 = vector.load %arg0[%c0_47, %c3, %c0_48] : memref<2x8x8xf32, #tpu.memory_space<vmem>>, vector<2x1x8xf32>
    %52 = vector.shape_cast %51 : vector<2x1x8xf32> to vector<2x8xf32>
    %cst_49 = arith.constant dense<0.000000e+00> : vector<2x8xf32>
    %53 = tpu.matmul %40, %0, %cst_49 {dimension_numbers = #tpu.dot_dimension_numbers<[1], [0], [0], [1], [0, 0, 1, 1], [], []>} : vector<2x8xf32>, vector<8x8xf32>, vector<2x8xf32> -> vector<2x8xf32>
    %54 = arith.addf %52, %53 : vector<2x8xf32>
    %55 = math.tanh %54 : vector<2x8xf32>
    %c0_50 = arith.constant 0 : index
    %c0_51 = arith.constant 0 : index
    %56 = vector.load %arg7[%c0_50, %c0_51] : memref<2x16xf32, #tpu.memory_space<vmem>>, vector<2x8xf32>
    tpu.vector_store %arg7[%c0_50, %c0_51], %55 {strides = array<i32>} : memref<2x16xf32, #tpu.memory_space<vmem>>, vector<2x8xf32>,
    %c0_52 = arith.constant 0 : index
    %c0_53 = arith.constant 0 : index
    %57 = vector.load %arg7[%c0_52, %c0_53] : memref<2x16xf32, #tpu.memory_space<vmem>>, vector<2x16xf32>
    %cst_54 = arith.constant dense<0.000000e+00> : vector<2x8xf32>
    %58 = tpu.matmul %57, %1, %cst_54 {dimension_numbers = #tpu.dot_dimension_numbers<[1], [0], [0], [1], [0, 0, 1, 1], [], []>} : vector<2x16xf32>, vector<16x8xf32>, vector<2x8xf32> -> vector<2x8xf32>
    %59 = vector.broadcast %2 : vector<1x8xf32> to vector<2x8xf32>
    %60 = arith.addf %58, %59 : vector<2x8xf32>
    %61 = math.tanh %60 : vector<2x8xf32>
    %c0_55 = arith.constant 0 : index
    %c8_56 = arith.constant 8 : index
    %62 = vector.load %arg7[%c0_55, %c8_56] : memref<2x16xf32, #tpu.memory_space<vmem>>, vector<2x8xf32>
    tpu.vector_store %arg7[%c0_55, %c8_56], %61 {strides = array<i32>} : memref<2x16xf32, #tpu.memory_space<vmem>>, vector<2x8xf32>,
    %c0_57 = arith.constant 0 : index
    %c3_58 = arith.constant 3 : index
    %c0_59 = arith.constant 0 : index
    %63 = vector.load %arg8[%c0_57, %c3_58, %c0_59] : memref<2x8x8xf32, #tpu.memory_space<vmem>>, vector<2x1x8xf32>
    %64 = vector.shape_cast %63 : vector<2x1x8xf32> to vector<2x8xf32>
    %65 = vector.shape_cast %61 : vector<2x8xf32> to vector<2x1x8xf32>
    tpu.vector_store %arg8[%c0_57, %c3_58, %c0_59], %65 {strides = array<i32>} : memref<2x8x8xf32, #tpu.memory_space<vmem>>, vector<2x1x8xf32>,
    %c0_60 = arith.constant 0 : index
    %c4 = arith.constant 4 : index
    %c0_61 = arith.constant 0 : index
    %66 = vector.load %arg0[%c0_60, %c4, %c0_61] : memref<2x8x8xf32, #tpu.memory_space<vmem>>, vector<2x1x8xf32>
    %67 = vector.shape_cast %66 : vector<2x1x8xf32> to vector<2x8xf32>
    %cst_62 = arith.constant dense<0.000000e+00> : vector<2x8xf32>
    %68 = tpu.matmul %55, %0, %cst_62 {dimension_numbers = #tpu.dot_dimension_numbers<[1], [0], [0], [1], [0, 0, 1, 1], [], []>} : vector<2x8xf32>, vector<8x8xf32>, vector<2x8xf32> -> vector<2x8xf32>
    %69 = arith.addf %67, %68 : vector<2x8xf32>
    %70 = math.tanh %69 : vector<2x8xf32>
    %c0_63 = arith.constant 0 : index
    %c0_64 = arith.constant 0 : index
    %71 = vector.load %arg7[%c0_63, %c0_64] : memref<2x16xf32, #tpu.memory_space<vmem>>, vector<2x8xf32>
    tpu.vector_store %arg7[%c0_63, %c0_64], %70 {strides = array<i32>} : memref<2x16xf32, #tpu.memory_space<vmem>>, vector<2x8xf32>,
    %c0_65 = arith.constant 0 : index
    %c0_66 = arith.constant 0 : index
    %72 = vector.load %arg7[%c0_65, %c0_66] : memref<2x16xf32, #tpu.memory_space<vmem>>, vector<2x16xf32>
    %cst_67 = arith.constant dense<0.000000e+00> : vector<2x8xf32>
    %73 = tpu.matmul %72, %1, %cst_67 {dimension_numbers = #tpu.dot_dimension_numbers<[1], [0], [0], [1], [0, 0, 1, 1], [], []>} : vector<2x16xf32>, vector<16x8xf32>, vector<2x8xf32> -> vector<2x8xf32>
    %74 = vector.broadcast %2 : vector<1x8xf32> to vector<2x8xf32>
    %75 = arith.addf %73, %74 : vector<2x8xf32>
    %76 = math.tanh %75 : vector<2x8xf32>
    %c0_68 = arith.constant 0 : index
    %c8_69 = arith.constant 8 : index
    %77 = vector.load %arg7[%c0_68, %c8_69] : memref<2x16xf32, #tpu.memory_space<vmem>>, vector<2x8xf32>
    tpu.vector_store %arg7[%c0_68, %c8_69], %76 {strides = array<i32>} : memref<2x16xf32, #tpu.memory_space<vmem>>, vector<2x8xf32>,
    %c0_70 = arith.constant 0 : index
    %c4_71 = arith.constant 4 : index
    %c0_72 = arith.constant 0 : index
    %78 = vector.load %arg8[%c0_70, %c4_71, %c0_72] : memref<2x8x8xf32, #tpu.memory_space<vmem>>, vector<2x1x8xf32>
    %79 = vector.shape_cast %78 : vector<2x1x8xf32> to vector<2x8xf32>
    %80 = vector.shape_cast %76 : vector<2x8xf32> to vector<2x1x8xf32>
    tpu.vector_store %arg8[%c0_70, %c4_71, %c0_72], %80 {strides = array<i32>} : memref<2x8x8xf32, #tpu.memory_space<vmem>>, vector<2x1x8xf32>,
    %c0_73 = arith.constant 0 : index
    %c5 = arith.constant 5 : index
    %c0_74 = arith.constant 0 : index
    %81 = vector.load %arg0[%c0_73, %c5, %c0_74] : memref<2x8x8xf32, #tpu.memory_space<vmem>>, vector<2x1x8xf32>
    %82 = vector.shape_cast %81 : vector<2x1x8xf32> to vector<2x8xf32>
    %cst_75 = arith.constant dense<0.000000e+00> : vector<2x8xf32>
    %83 = tpu.matmul %70, %0, %cst_75 {dimension_numbers = #tpu.dot_dimension_numbers<[1], [0], [0], [1], [0, 0, 1, 1], [], []>} : vector<2x8xf32>, vector<8x8xf32>, vector<2x8xf32> -> vector<2x8xf32>
    %84 = arith.addf %82, %83 : vector<2x8xf32>
    %85 = math.tanh %84 : vector<2x8xf32>
    %c0_76 = arith.constant 0 : index
    %c0_77 = arith.constant 0 : index
    %86 = vector.load %arg7[%c0_76, %c0_77] : memref<2x16xf32, #tpu.memory_space<vmem>>, vector<2x8xf32>
    tpu.vector_store %arg7[%c0_76, %c0_77], %85 {strides = array<i32>} : memref<2x16xf32, #tpu.memory_space<vmem>>, vector<2x8xf32>,
    %c0_78 = arith.constant 0 : index
    %c0_79 = arith.constant 0 : index
    %87 = vector.load %arg7[%c0_78, %c0_79] : memref<2x16xf32, #tpu.memory_space<vmem>>, vector<2x16xf32>
    %cst_80 = arith.constant dense<0.000000e+00> : vector<2x8xf32>
    %88 = tpu.matmul %87, %1, %cst_80 {dimension_numbers = #tpu.dot_dimension_numbers<[1], [0], [0], [1], [0, 0, 1, 1], [], []>} : vector<2x16xf32>, vector<16x8xf32>, vector<2x8xf32> -> vector<2x8xf32>
    %89 = vector.broadcast %2 : vector<1x8xf32> to vector<2x8xf32>
    %90 = arith.addf %88, %89 : vector<2x8xf32>
    %91 = math.tanh %90 : vector<2x8xf32>
    %c0_81 = arith.constant 0 : index
    %c8_82 = arith.constant 8 : index
    %92 = vector.load %arg7[%c0_81, %c8_82] : memref<2x16xf32, #tpu.memory_space<vmem>>, vector<2x8xf32>
    tpu.vector_store %arg7[%c0_81, %c8_82], %91 {strides = array<i32>} : memref<2x16xf32, #tpu.memory_space<vmem>>, vector<2x8xf32>,
    %c0_83 = arith.constant 0 : index
    %c5_84 = arith.constant 5 : index
    %c0_85 = arith.constant 0 : index
    %93 = vector.load %arg8[%c0_83, %c5_84, %c0_85] : memref<2x8x8xf32, #tpu.memory_space<vmem>>, vector<2x1x8xf32>
    %94 = vector.shape_cast %93 : vector<2x1x8xf32> to vector<2x8xf32>
    %95 = vector.shape_cast %91 : vector<2x8xf32> to vector<2x1x8xf32>
    tpu.vector_store %arg8[%c0_83, %c5_84, %c0_85], %95 {strides = array<i32>} : memref<2x8x8xf32, #tpu.memory_space<vmem>>, vector<2x1x8xf32>,
    %c0_86 = arith.constant 0 : index
    %c6 = arith.constant 6 : index
    %c0_87 = arith.constant 0 : index
    %96 = vector.load %arg0[%c0_86, %c6, %c0_87] : memref<2x8x8xf32, #tpu.memory_space<vmem>>, vector<2x1x8xf32>
    %97 = vector.shape_cast %96 : vector<2x1x8xf32> to vector<2x8xf32>
    %cst_88 = arith.constant dense<0.000000e+00> : vector<2x8xf32>
    %98 = tpu.matmul %85, %0, %cst_88 {dimension_numbers = #tpu.dot_dimension_numbers<[1], [0], [0], [1], [0, 0, 1, 1], [], []>} : vector<2x8xf32>, vector<8x8xf32>, vector<2x8xf32> -> vector<2x8xf32>
    %99 = arith.addf %97, %98 : vector<2x8xf32>
    %100 = math.tanh %99 : vector<2x8xf32>
    %c0_89 = arith.constant 0 : index
    %c0_90 = arith.constant 0 : index
    %101 = vector.load %arg7[%c0_89, %c0_90] : memref<2x16xf32, #tpu.memory_space<vmem>>, vector<2x8xf32>
    tpu.vector_store %arg7[%c0_89, %c0_90], %100 {strides = array<i32>} : memref<2x16xf32, #tpu.memory_space<vmem>>, vector<2x8xf32>,
    %c0_91 = arith.constant 0 : index
    %c0_92 = arith.constant 0 : index
    %102 = vector.load %arg7[%c0_91, %c0_92] : memref<2x16xf32, #tpu.memory_space<vmem>>, vector<2x16xf32>
    %cst_93 = arith.constant dense<0.000000e+00> : vector<2x8xf32>
    %103 = tpu.matmul %102, %1, %cst_93 {dimension_numbers = #tpu.dot_dimension_numbers<[1], [0], [0], [1], [0, 0, 1, 1], [], []>} : vector<2x16xf32>, vector<16x8xf32>, vector<2x8xf32> -> vector<2x8xf32>
    %104 = vector.broadcast %2 : vector<1x8xf32> to vector<2x8xf32>
    %105 = arith.addf %103, %104 : vector<2x8xf32>
    %106 = math.tanh %105 : vector<2x8xf32>
    %c0_94 = arith.constant 0 : index
    %c8_95 = arith.constant 8 : index
    %107 = vector.load %arg7[%c0_94, %c8_95] : memref<2x16xf32, #tpu.memory_space<vmem>>, vector<2x8xf32>
    tpu.vector_store %arg7[%c0_94, %c8_95], %106 {strides = array<i32>} : memref<2x16xf32, #tpu.memory_space<vmem>>, vector<2x8xf32>,
    %c0_96 = arith.constant 0 : index
    %c6_97 = arith.constant 6 : index
    %c0_98 = arith.constant 0 : index
    %108 = vector.load %arg8[%c0_96, %c6_97, %c0_98] : memref<2x8x8xf32, #tpu.memory_space<vmem>>, vector<2x1x8xf32>
    %109 = vector.shape_cast %108 : vector<2x1x8xf32> to vector<2x8xf32>
    %110 = vector.shape_cast %106 : vector<2x8xf32> to vector<2x1x8xf32>
    tpu.vector_store %arg8[%c0_96, %c6_97, %c0_98], %110 {strides = array<i32>} : memref<2x8x8xf32, #tpu.memory_space<vmem>>, vector<2x1x8xf32>,
    %c0_99 = arith.constant 0 : index
    %c7 = arith.constant 7 : index
    %c0_100 = arith.constant 0 : index
    %111 = vector.load %arg0[%c0_99, %c7, %c0_100] : memref<2x8x8xf32, #tpu.memory_space<vmem>>, vector<2x1x8xf32>
    %112 = vector.shape_cast %111 : vector<2x1x8xf32> to vector<2x8xf32>
    %cst_101 = arith.constant dense<0.000000e+00> : vector<2x8xf32>
    %113 = tpu.matmul %100, %0, %cst_101 {dimension_numbers = #tpu.dot_dimension_numbers<[1], [0], [0], [1], [0, 0, 1, 1], [], []>} : vector<2x8xf32>, vector<8x8xf32>, vector<2x8xf32> -> vector<2x8xf32>
    %114 = arith.addf %112, %113 : vector<2x8xf32>
    %115 = math.tanh %114 : vector<2x8xf32>
    %c0_102 = arith.constant 0 : index
    %c0_103 = arith.constant 0 : index
    %116 = vector.load %arg7[%c0_102, %c0_103] : memref<2x16xf32, #tpu.memory_space<vmem>>, vector<2x8xf32>
    tpu.vector_store %arg7[%c0_102, %c0_103], %115 {strides = array<i32>} : memref<2x16xf32, #tpu.memory_space<vmem>>, vector<2x8xf32>,
    %c0_104 = arith.constant 0 : index
    %c0_105 = arith.constant 0 : index
    %117 = vector.load %arg7[%c0_104, %c0_105] : memref<2x16xf32, #tpu.memory_space<vmem>>, vector<2x16xf32>
    %cst_106 = arith.constant dense<0.000000e+00> : vector<2x8xf32>
    %118 = tpu.matmul %117, %1, %cst_106 {dimension_numbers = #tpu.dot_dimension_numbers<[1], [0], [0], [1], [0, 0, 1, 1], [], []>} : vector<2x16xf32>, vector<16x8xf32>, vector<2x8xf32> -> vector<2x8xf32>
    %119 = vector.broadcast %2 : vector<1x8xf32> to vector<2x8xf32>
    %120 = arith.addf %118, %119 : vector<2x8xf32>
    %121 = math.tanh %120 : vector<2x8xf32>
    %c0_107 = arith.constant 0 : index
    %c8_108 = arith.constant 8 : index
    %122 = vector.load %arg7[%c0_107, %c8_108] : memref<2x16xf32, #tpu.memory_space<vmem>>, vector<2x8xf32>
    tpu.vector_store %arg7[%c0_107, %c8_108], %121 {strides = array<i32>} : memref<2x16xf32, #tpu.memory_space<vmem>>, vector<2x8xf32>,
    %c0_109 = arith.constant 0 : index
    %c7_110 = arith.constant 7 : index
    %c0_111 = arith.constant 0 : index
    %123 = vector.load %arg8[%c0_109, %c7_110, %c0_111] : memref<2x8x8xf32, #tpu.memory_space<vmem>>, vector<2x1x8xf32>
    %124 = vector.shape_cast %123 : vector<2x1x8xf32> to vector<2x8xf32>
    %125 = vector.shape_cast %121 : vector<2x8xf32> to vector<2x1x8xf32>
    tpu.vector_store %arg8[%c0_109, %c7_110, %c0_111], %125 {strides = array<i32>} : memref<2x8x8xf32, #tpu.memory_space<vmem>>, vector<2x1x8xf32>,
    %c0_112 = arith.constant 0 : index
    %c0_113 = arith.constant 0 : index
    %c0_114 = arith.constant 0 : index
    %126 = vector.load %arg8[%c0_112, %c0_113, %c0_114] : memref<2x8x8xf32, #tpu.memory_space<vmem>>, vector<2x8x8xf32>
    %127 = vector.shape_cast %126 : vector<2x8x8xf32> to vector<16x8xf32>
    %c0_115 = arith.constant 0 : index
    %c0_116 = arith.constant 0 : index
    %128 = vector.load %arg4[%c0_115, %c0_116] : memref<8x128xf32, #tpu.memory_space<vmem>>, vector<8x128xf32>
    %cst_117 = arith.constant dense<0.000000e+00> : vector<16x128xf32>
    %129 = tpu.matmul %127, %128, %cst_117 {dimension_numbers = #tpu.dot_dimension_numbers<[1], [0], [0], [1], [0, 0, 1, 1], [], []>} : vector<16x8xf32>, vector<8x128xf32>, vector<16x128xf32> -> vector<16x128xf32>
    %c0_118 = arith.constant 0 : index
    %c0_119 = arith.constant 0 : index
    %130 = vector.load %arg5[%c0_118, %c0_119] : memref<1x128xf32, #tpu.memory_space<vmem>>, vector<1x128xf32>
    %131 = vector.broadcast %130 : vector<1x128xf32> to vector<16x128xf32>
    %132 = arith.addf %129, %131 : vector<16x128xf32>
    %c0_120 = arith.constant 0 : index
    %c0_121 = arith.constant 0 : index
    %133 = vector.load %arg6[%c0_120, %c0_121] : memref<16x128xf32, #tpu.memory_space<vmem>>, vector<16x128xf32>
    tpu.vector_store %arg6[%c0_120, %c0_121], %132 {strides = array<i32>} : memref<16x128xf32, #tpu.memory_space<vmem>>, vector<16x128xf32>,
    return
  }
}

</mosaic_0001>

<bundles_post_ra>
// kernel: model_forward.1
= control target key start
LH: loop header
LB: loop body
LE: loop exit
PB: predicated region body
PF: predicated region fallthrough
CT: control target
= control target key end

     0   :  { %v1906_v0 = vmov 0.0   ;;  %vm1907_vm0 = vmmov 0   ;;  %vm27_vm1 = vcmask 123904   ;;  %vm116_vm2 = vcmask 1041409   ;;  %s2210_s1 = inlined_call_operand.vmem [shape: f32[8,8], index: 1, kind: input, shape index: {}]   ;;  %s2211_s2 = inlined_call_operand.vmem [shape: f32[16,8], index: 2, kind: input, shape index: {}]   ;;  %s2212_s0 = inlined_call_operand.vmem [shape: f32[2,8,8], index: 0, kind: input, shape index: {}]   ;;  %s2213_s3 = inlined_call_operand.vmem [shape: f32[1,8], index: 3, kind: input, shape index: {}]   ;;  %s2214_s4 = inlined_call_operand.vmem [shape: f32[8,128], index: 4, kind: input, shape index: {}]   ;;  %s2215_s5 = inlined_call_operand.vmem [shape: f32[1,128], index: 5, kind: input, shape index: {}]   ;;  %s2216_s6 = inlined_call_operand.vmem [shape: f32[16,128], index: 6, kind: output, shape index: {}]  }
   0x1   :  { %1753 = vmatprep.subr.mxu0 %v1906_v0  ;;  %v1949_v1 = vld [vmem:[%s2210_s1] sm:$0xff]  ;;  %1755 = vmatprep.mubr.msk.f32.mxu0 %vm1907_vm0, %v1906_v0  ;;  %28 = vst.msk [vmem:[#allocation2] sm:$0x3] %vm27_vm1, %v1906_v0  ;;  %v1967_v2 = vld [vmem:[%s2211_s2 + $0x8] sm:$0xff]  ;;  %vm31_vm3 = vcmask 64512   ;;  %vm119_vm4 = vcmask 58368   ;;  %v212_v29 = vlaneseq }
   0x2   :  { %1754 = vmatpush3.msra.mxu0 %v1949_v1  ;;  %1758 = vmatprep.subr.mxu1 %v1906_v0  ;;  %v1974_v3 = vld [vmem:[%s2211_s2] sm:$0xff]  ;;  %v30_v5 = vld [vmem:[%s2212_s0 + $0x8] sm:$0x1]  ;;  %vm128_vm5 = vcmask 130048   ;;  %v237_v17 = vld [vmem:[%s2212_s0 + $0x9] sm:$0x1] }
   0x3   :  { %1756 = vmatmul.mubr.f32.vlgmr.msra.gmra.mxu0 %v1906_v0  ;;  %1765 = vmatprep.subr.mxu0 %v1906_v0  ;;  %v29_v4 = vld [vmem:[%s2212_s0] sm:$0x1]  ;;  %v236_v16 = vld [vmem:[%s2212_s0 + $0x1] sm:$0x1]  ;;  %v1908_v27 = vmov 1966171168  }
   0x4   :  { %1766 = vmatpush3.msra.mxu0 %v1949_v1  ;;  %1767 = vmatprep.mubr.msk.f32.mxu0 %vm1907_vm0, %v1906_v0  ;;  %v2007_v23 = vld [vmem:[%s2213_s3] ss:$0 sm:$0xff]  ;;  %v210_v28 = vunpack.c.l.s4 %v1908_v27  ;;  %v213_v31 = vshrl.u32 %v212_v29, 7  ;;  %s1909_s3 = smov 8   ;;  %vm233_vm6 = vcmask 57344   ;;  %vm207_vm7 = vcmask 123968  }
   0x5   :  { %1762 = vmatprep.mubr.msk.f32.mxu1 %vm1907_vm0, %v1906_v0  ;;  %1777 = vmatprep.subr.mxu0 %v1906_v0  ;;  %v430_v44 = vld [vmem:[%s2212_s0 + $0x2] sm:$0x1]  ;;  %v431_v45 = vld [vmem:[%s2212_s0 + $0xa] sm:$0x1]  ;;  %v624_v63 = vld [vmem:[%s2212_s0 + $0x3] sm:$0x1] }
   0x6   :  { %1759 = vmatpush3.msra.mxu1 %v1967_v2  ;;  %v211_v30 = vunpack.c.0.s8 %v210_v28 }
   0x7   :  { %1760 = vmatprep.subr.mxu1 %v1906_v0 }
   0x8   :  { %1761 = vmatpush3.msra.mxu1 %v1974_v3  ;;  %v2010_v35 = vsub.s32 %v211_v30, %v213_v31 }
   0x9   :  { %1770 = vmatprep.subr.mxu1 %v1906_v0 }
  0xc3   :  { %v101_v6 = vpop.f32.mrf.mxu0 }
  0xc4   :  { %v106_v7 = vrot.slane %v101_v6, 1  ;;  %v109_v9 = vadd.f32 %v101_v6, %v29_v4  ;;  %v625_v4 = vld [vmem:[%s2212_s0 + $0xb] sm:$0x1] }
  0xc5   :  { %v1757_v8 = vpop.f32.mrf.mxu0 }
  0xc6   :  { %v110_v10 = vadd.f32 %v106_v7, %v30_v5 }
  0xc8   :  { %1858 = vtanh.f32 %v110_v10 }
  0xc9   :  { %1860 = vtanh.f32 %v109_v9 }
  0xd5   :  { %v1859_v11 = vpop.eup %1858 }
  0xd6   :  { %v115_v12 = vrot.slane %v1859_v11, 7  ;;  %v1861_v13 = vpop.eup %1860 }
  0xd8   :  { %v117_v14 = vsel %vm116_vm2, %v115_v12, %v1861_v13 }
  0xd9   :  { %120 = vst.msk [vmem:[#allocation2] sm:$0x3] %vm119_vm4, %v117_v14  ;;  %1768 = vmatmul.mubr.msk.f32.vlgmr.msra.gmra.mxu0 %vm31_vm3, %v117_v14 }
  0xda   :  { %1778 = vmatpush3.msra.mxu0 %v1949_v1  ;;  %1779 = vmatprep.mubr.msk.f32.mxu0 %vm1907_vm0, %v1906_v0 }
  0xdb   :  { %1789 = vmatprep.subr.mxu0 %v1906_v0 }
  0xe0   :  { %v121_v15 = vld [vmem:[#allocation2] sm:$0x3] }
  0xe1   :  { %1763 = vmatmul.mubr.msk.f32.vlgmr.msra.gmra.mxu1 %vm128_vm5, %v121_v15 }
  0xe2   :  { %1771 = vmatpush3.msra.mxu1 %v1967_v2  ;;  %1774 = vmatprep.mubr.msk.f32.mxu1 %vm1907_vm0, %v1906_v0 }
  0xe3   :  { %1772 = vmatprep.subr.mxu1 %v1906_v0 }
  0xe4   :  { %1773 = vmatpush3.msra.mxu1 %v1974_v3 }
  0xe5   :  { %1782 = vmatprep.subr.mxu1 %v1906_v0 }
 0x199   :  { %v306_v18 = vpop.f32.mrf.mxu0 }
 0x19a   :  { %v311_v19 = vrot.slane %v306_v18, 1  ;;  %v314_v21 = vadd.f32 %v306_v18, %v236_v16  ;;  %v818_v16 = vld [vmem:[%s2212_s0 + $0x4] sm:$0x1] }
 0x19b   :  { %v1769_v20 = vpop.f32.mrf.mxu0 }
 0x19c   :  { %v315_v22 = vadd.f32 %v311_v19, %v237_v17  ;;  %v819_v17 = vld [vmem:[%s2212_s0 + $0xc] sm:$0x1] }
 0x19e   :  { %1862 = vtanh.f32 %v315_v22 }
 0x19f   :  { %1864 = vtanh.f32 %v314_v21 }
 0x1a1   :  { %v198_v24 = vpop.f32.mrf.mxu1 }
 0x1a2   :  { %v199_v25 = vadd.f32 %v2007_v23, %v198_v24 }
 0x1a3   :  { %v1764_v26 = vpop.f32.mrf.mxu1 }
 0x1a4   :  { %1866 = vtanh.f32 %v199_v25 }
 0x1ab   :  { %v1863_v32 = vpop.eup %1862 }
 0x1ac   :  { %v320_v33 = vrot.slane %v1863_v32, 7  ;;  %v1865_v34 = vpop.eup %1864 }
 0x1ae   :  { %v321_v36 = vsel %vm116_vm2, %v320_v33, %v1865_v34 }
 0x1af   :  { %1780 = vmatmul.mubr.msk.f32.vlgmr.msra.gmra.mxu0 %vm31_vm3, %v321_v36 }
 0x1b0   :  { %1790 = vmatpush3.msra.mxu0 %v1949_v1  ;;  %1791 = vmatprep.mubr.msk.f32.mxu0 %vm1907_vm0, %v1906_v0 }
 0x1b1   :  { %v1867_v37 = vpop.eup %1866  ;;  %1801 = vmatprep.subr.mxu0 %v1906_v0 }
 0x1b2   :  { %v215_v38 = vrot.slane %v1867_v37, %v2010_v35  ;;  %204 = vrot.lane.b32.xlu0 %v1867_v37, %s1909_s3 }
 0x1b4   :  { %v216_v39 = vcombine.high %v215_v38, %v215_v38  ;;  %v223_v40 = vrot.slane %v215_v38, %v2010_v35 }
 0x1b6   :  { %v230_v41 = vrot.slane %v216_v39, %v2010_v35  ;;  %234 = vst.msk [vmem:[#allocation3] sm:$0x1] %vm233_vm6, %v223_v40  ;;  %v1012_v39 = vld [vmem:[%s2212_s0 + $0x5] sm:$0x1]  ;;  %v1013_v40 = vld [vmem:[%s2212_s0 + $0xd] sm:$0x1] }
 0x1b8   :  { %235 = vst.msk [vmem:[#allocation3 + $0x8] sm:$0x1] %vm233_vm6, %v230_v41 }
 0x224   :  { %v205_v42 = vpop.permute.xlu0 %204 }
 0x225   :  { %208 = vst.msk [vmem:[#allocation2] sm:$0x3] %vm207_vm7, %v205_v42 }
 0x226   :  { %323 = vst.msk [vmem:[#allocation2] sm:$0x3] %vm119_vm4, %v321_v36 }
 0x22d   :  { %v324_v43 = vld [vmem:[#allocation2] sm:$0x3] }
 0x22e   :  { %1775 = vmatmul.mubr.msk.f32.vlgmr.msra.gmra.mxu1 %vm128_vm5, %v324_v43 }
 0x22f   :  { %1783 = vmatpush3.msra.mxu1 %v1967_v2  ;;  %1786 = vmatprep.mubr.msk.f32.mxu1 %vm1907_vm0, %v1906_v0 }
 0x230   :  { %1784 = vmatprep.subr.mxu1 %v1906_v0 }
 0x231   :  { %1785 = vmatpush3.msra.mxu1 %v1974_v3 }
 0x232   :  { %1794 = vmatprep.subr.mxu1 %v1906_v0 }
 0x26f   :  { %v500_v46 = vpop.f32.mrf.mxu0 }
 0x270   :  { %v505_v47 = vrot.slane %v500_v46, 1  ;;  %v508_v49 = vadd.f32 %v500_v46, %v430_v44 }
 0x271   :  { %v1781_v48 = vpop.f32.mrf.mxu0 }
 0x272   :  { %v509_v50 = vadd.f32 %v505_v47, %v431_v45 }
 0x274   :  { %1868 = vtanh.f32 %v509_v50 }
 0x275   :  { %1870 = vtanh.f32 %v508_v49 }
 0x281   :  { %v1869_v51 = vpop.eup %1868 }
 0x282   :  { %v514_v52 = vrot.slane %v1869_v51, 7  ;;  %v1871_v53 = vpop.eup %1870 }
 0x284   :  { %v515_v54 = vsel %vm116_vm2, %v514_v52, %v1871_v53 }
 0x285   :  { %1792 = vmatmul.mubr.msk.f32.vlgmr.msra.gmra.mxu0 %vm31_vm3, %v515_v54 }
 0x286   :  { %1802 = vmatpush3.msra.mxu0 %v1949_v1  ;;  %1803 = vmatprep.mubr.msk.f32.mxu0 %vm1907_vm0, %v1906_v0 }
 0x287   :  { %1813 = vmatprep.subr.mxu0 %v1906_v0 }
 0x2ee   :  { %v394_v55 = vpop.f32.mrf.mxu1 }
 0x2ef   :  { %v395_v56 = vadd.f32 %v2007_v23, %v394_v55 }
 0x2f0   :  { %v1776_v57 = vpop.f32.mrf.mxu1 }
 0x2f1   :  { %1872 = vtanh.f32 %v395_v56 }
 0x2fe   :  { %v1873_v58 = vpop.eup %1872 }
 0x2ff   :  { %v410_v59 = vrot.slane %v1873_v58, %v2010_v35  ;;  %400 = vrot.lane.b32.xlu0 %v1873_v58, %s1909_s3  ;;  %v1207_v58 = vld [vmem:[%s2212_s0 + $0xe] sm:$0x1] }
 0x301   :  { %v411_v60 = vcombine.high %v410_v59, %v410_v59  ;;  %v418_v61 = vrot.slane %v410_v59, %v2010_v35 }
 0x303   :  { %v425_v62 = vrot.slane %v411_v60, %v2010_v35  ;;  %428 = vst.msk [vmem:[#allocation3 + $0x1] sm:$0x1] %vm233_vm6, %v418_v61 }
 0x305   :  { %429 = vst.msk [vmem:[#allocation3 + $0x9] sm:$0x1] %vm233_vm6, %v425_v62 }
 0x345   :  { %v694_v5 = vpop.f32.mrf.mxu0 }
 0x346   :  { %v699_v6 = vrot.slane %v694_v5, 1  ;;  %v702_v8 = vadd.f32 %v694_v5, %v624_v63 }
 0x347   :  { %v1793_v7 = vpop.f32.mrf.mxu0 }
 0x348   :  { %v703_v9 = vadd.f32 %v699_v6, %v625_v4 }
 0x34a   :  { %1874 = vtanh.f32 %v703_v9 }
 0x34b   :  { %1876 = vtanh.f32 %v702_v8 }
 0x357   :  { %v1875_v10 = vpop.eup %1874 }
 0x358   :  { %v708_v11 = vrot.slane %v1875_v10, 7  ;;  %v1877_v12 = vpop.eup %1876 }
 0x35a   :  { %v709_v13 = vsel %vm116_vm2, %v708_v11, %v1877_v12 }
 0x35b   :  { %1804 = vmatmul.mubr.msk.f32.vlgmr.msra.gmra.mxu0 %vm31_vm3, %v709_v13 }
 0x35c   :  { %1814 = vmatpush3.msra.mxu0 %v1949_v1  ;;  %1815 = vmatprep.mubr.msk.f32.mxu0 %vm1907_vm0, %v1906_v0 }
 0x35d   :  { %1825 = vmatprep.subr.mxu0 %v1906_v0 }
 0x371   :  { %v401_v14 = vpop.permute.xlu0 %400 }
 0x372   :  { %403 = vst.msk [vmem:[#allocation2] sm:$0x3] %vm207_vm7, %v401_v14 }
 0x373   :  { %517 = vst.msk [vmem:[#allocation2] sm:$0x3] %vm119_vm4, %v515_v54 }
 0x37a   :  { %v518_v15 = vld [vmem:[#allocation2] sm:$0x3] }
 0x37b   :  { %1787 = vmatmul.mubr.msk.f32.vlgmr.msra.gmra.mxu1 %vm128_vm5, %v518_v15 }
 0x37c   :  { %1795 = vmatpush3.msra.mxu1 %v1967_v2  ;;  %1798 = vmatprep.mubr.msk.f32.mxu1 %vm1907_vm0, %v1906_v0 }
 0x37d   :  { %1796 = vmatprep.subr.mxu1 %v1906_v0 }
 0x37e   :  { %1797 = vmatpush3.msra.mxu1 %v1974_v3 }
 0x37f   :  { %1806 = vmatprep.subr.mxu1 %v1906_v0 }
 0x41b   :  { %v888_v18 = vpop.f32.mrf.mxu0 }
 0x41c   :  { %v893_v19 = vrot.slane %v888_v18, 1  ;;  %v896_v21 = vadd.f32 %v888_v18, %v818_v16 }
 0x41d   :  { %v1805_v20 = vpop.f32.mrf.mxu0 }
 0x41e   :  { %v897_v22 = vadd.f32 %v893_v19, %v819_v17 }
 0x420   :  { %1878 = vtanh.f32 %v897_v22 }
 0x421   :  { %1880 = vtanh.f32 %v896_v21 }
 0x42d   :  { %v1879_v24 = vpop.eup %1878 }
 0x42e   :  { %v902_v25 = vrot.slane %v1879_v24, 7  ;;  %v1881_v26 = vpop.eup %1880 }
 0x430   :  { %v2080_v27 = vsel %vm116_vm2, %v902_v25, %v1881_v26 }
 0x431   :  { %1816 = vmatmul.mubr.msk.f32.vlgmr.msra.gmra.mxu0 %vm31_vm3, %v2080_v27 }
 0x432   :  { %1826 = vmatpush3.msra.mxu0 %v1949_v1  ;;  %1827 = vmatprep.mubr.msk.f32.mxu0 %vm1907_vm0, %v1906_v0 }
 0x433   :  { %1837 = vmatprep.subr.mxu0 %v1906_v0 }
 0x43b   :  { %v588_v28 = vpop.f32.mrf.mxu1 }
 0x43c   :  { %v589_v29 = vadd.f32 %v2007_v23, %v588_v28 }
 0x43d   :  { %v1788_v30 = vpop.f32.mrf.mxu1 }
 0x43e   :  { %1882 = vtanh.f32 %v589_v29 }
 0x44b   :  { %v1883_v31 = vpop.eup %1882 }
 0x44c   :  { %v604_v32 = vrot.slane %v1883_v31, %v2010_v35  ;;  %594 = vrot.lane.b32.xlu1 %v1883_v31, %s1909_s3 }
 0x44e   :  { %v605_v33 = vcombine.high %v604_v32, %v604_v32  ;;  %v612_v34 = vrot.slane %v604_v32, %v2010_v35 }
 0x450   :  { %v619_v36 = vrot.slane %v605_v33, %v2010_v35  ;;  %622 = vst.msk [vmem:[#allocation3 + $0x2] sm:$0x1] %vm233_vm6, %v612_v34 }
 0x452   :  { %623 = vst.msk [vmem:[#allocation3 + $0xa] sm:$0x1] %vm233_vm6, %v619_v36 }
 0x4be   :  { %v595_v37 = vpop.permute.xlu1 %594 }
 0x4bf   :  { %597 = vst.msk [vmem:[#allocation2] sm:$0x3] %vm207_vm7, %v595_v37 }
 0x4c0   :  { %711 = vst.msk [vmem:[#allocation2] sm:$0x3] %vm119_vm4, %v709_v13 }
 0x4c7   :  { %v712_v38 = vld [vmem:[#allocation2] sm:$0x3] }
 0x4c8   :  { %1799 = vmatmul.mubr.msk.f32.vlgmr.msra.gmra.mxu1 %vm128_vm5, %v712_v38 }
 0x4c9   :  { %1807 = vmatpush3.msra.mxu1 %v1967_v2  ;;  %1810 = vmatprep.mubr.msk.f32.mxu1 %vm1907_vm0, %v1906_v0 }
 0x4ca   :  { %1808 = vmatprep.subr.mxu1 %v1906_v0 }
 0x4cb   :  { %1809 = vmatpush3.msra.mxu1 %v1974_v3 }
 0x4cc   :  { %1818 = vmatprep.subr.mxu1 %v1906_v0 }
 0x4f1   :  { %v1082_v41 = vpop.f32.mrf.mxu0 }
 0x4f2   :  { %v1087_v42 = vrot.slane %v1082_v41, 1  ;;  %v1090_v44 = vadd.f32 %v1082_v41, %v1012_v39 }
 0x4f3   :  { %v1817_v43 = vpop.f32.mrf.mxu0 }
 0x4f4   :  { %v1091_v45 = vadd.f32 %v1087_v42, %v1013_v40  ;;  %v1400_v42 = vld [vmem:[%s2212_s0 + $0x7] sm:$0x1] }
 0x4f6   :  { %1884 = vtanh.f32 %v1091_v45 }
 0x4f7   :  { %1886 = vtanh.f32 %v1090_v44 }
 0x503   :  { %v1885_v46 = vpop.eup %1884 }
 0x504   :  { %v1096_v47 = vrot.slane %v1885_v46, 7  ;;  %v1887_v48 = vpop.eup %1886 }
 0x506   :  { %v1097_v49 = vsel %vm116_vm2, %v1096_v47, %v1887_v48 }
 0x507   :  { %1828 = vmatmul.mubr.msk.f32.vlgmr.msra.gmra.mxu0 %vm31_vm3, %v1097_v49 }
 0x508   :  { %1838 = vmatpush3.msra.mxu0 %v1949_v1  ;;  %1839 = vmatprep.mubr.msk.f32.mxu0 %vm1907_vm0, %v1906_v0  ;;  %v1206_v1 = vld [vmem:[%s2212_s0 + $0x6] sm:$0x1] }
 0x588   :  { %v782_v50 = vpop.f32.mrf.mxu1 }
 0x589   :  { %v783_v51 = vadd.f32 %v2007_v23, %v782_v50  ;;  %v1596_v50 = vld [vmem:[%s2214_s4] sm:$0xff] }
 0x58a   :  { %v1800_v52 = vpop.f32.mrf.mxu1  ;;  %1849 = vmatprep.subr.mxu0 %v1596_v50 }
 0x58b   :  { %1888 = vtanh.f32 %v783_v51 }
 0x598   :  { %v1889_v53 = vpop.eup %1888 }
 0x599   :  { %v798_v54 = vrot.slane %v1889_v53, %v2010_v35  ;;  %788 = vrot.lane.b32.xlu1 %v1889_v53, %s1909_s3 }
 0x59b   :  { %v799_v55 = vcombine.high %v798_v54, %v798_v54  ;;  %v806_v56 = vrot.slane %v798_v54, %v2010_v35 }
 0x59d   :  { %v813_v57 = vrot.slane %v799_v55, %v2010_v35  ;;  %816 = vst.msk [vmem:[#allocation3 + $0x3] sm:$0x1] %vm233_vm6, %v806_v56 }
 0x59f   :  { %817 = vst.msk [vmem:[#allocation3 + $0xb] sm:$0x1] %vm233_vm6, %v813_v57 }
 0x5c7   :  { %v1276_v59 = vpop.f32.mrf.mxu0 }
 0x5c8   :  { %v1281_v60 = vrot.slane %v1276_v59, 1  ;;  %v1284_v62 = vadd.f32 %v1276_v59, %v1206_v1 }
 0x5c9   :  { %v1829_v61 = vpop.f32.mrf.mxu0 }
 0x5ca   :  { %v1285_v63 = vadd.f32 %v1281_v60, %v1207_v58  ;;  %v1707_v60 = vld [vmem:[%s2215_s5] ss:$0 sm:$0xff] }
 0x5cc   :  { %1890 = vtanh.f32 %v1285_v63 }
 0x5cd   :  { %1892 = vtanh.f32 %v1284_v62 }
 0x5d9   :  { %v1891_v4 = vpop.eup %1890 }
 0x5da   :  { %v1290_v5 = vrot.slane %v1891_v4, 7  ;;  %v1893_v6 = vpop.eup %1892 }
 0x5dc   :  { %v1291_v7 = vsel %vm116_vm2, %v1290_v5, %v1893_v6 }
 0x5dd   :  { %1840 = vmatmul.mubr.msk.f32.vlgmr.msra.gmra.mxu0 %vm31_vm3, %v1291_v7 }
 0x5de   :  { %1850 = vmatpush3.msra.mxu0 %v1596_v50 }
 0x60b   :  { %v789_v8 = vpop.permute.xlu1 %788 }
 0x60c   :  { %791 = vst.msk [vmem:[#allocation2] sm:$0x3] %vm207_vm7, %v789_v8 }
 0x60d   :  { %905 = vst.msk [vmem:[#allocation2] sm:$0x3] %vm119_vm4, %v2080_v27 }
 0x614   :  { %v906_v9 = vld [vmem:[#allocation2] sm:$0x3] }
 0x615   :  { %1811 = vmatmul.mubr.msk.f32.vlgmr.msra.gmra.mxu1 %vm128_vm5, %v906_v9 }
 0x616   :  { %1819 = vmatpush3.msra.mxu1 %v1967_v2  ;;  %1822 = vmatprep.mubr.msk.f32.mxu1 %vm1907_vm0, %v1906_v0 }
 0x617   :  { %1820 = vmatprep.subr.mxu1 %v1906_v0 }
 0x618   :  { %1821 = vmatpush3.msra.mxu1 %v1974_v3 }
 0x619   :  { %1830 = vmatprep.subr.mxu1 %v1906_v0 }
 0x69d   :  { %v1470_v10 = vpop.f32.mrf.mxu0 }
 0x69e   :  { %v1478_v43 = vadd.f32 %v1470_v10, %v1400_v42 }
 0x69f   :  { %v1841_v11 = vpop.f32.mrf.mxu0 }
 0x6d5   :  { %v976_v12 = vpop.f32.mrf.mxu1 }
 0x6d6   :  { %v977_v13 = vadd.f32 %v2007_v23, %v976_v12 }
 0x6d7   :  { %v1812_v14 = vpop.f32.mrf.mxu1 }
 0x6d8   :  { %1894 = vtanh.f32 %v977_v13 }
 0x6e5   :  { %v1895_v15 = vpop.eup %1894 }
 0x6e6   :  { %v992_v16 = vrot.slane %v1895_v15, %v2010_v35  ;;  %982 = vrot.lane.b32.xlu0 %v1895_v15, %s1909_s3 }
 0x6e8   :  { %v993_v17 = vcombine.high %v992_v16, %v992_v16  ;;  %v1000_v18 = vrot.slane %v992_v16, %v2010_v35 }
 0x6ea   :  { %v1007_v19 = vrot.slane %v993_v17, %v2010_v35  ;;  %1010 = vst.msk [vmem:[#allocation3 + $0x4] sm:$0x1] %vm233_vm6, %v1000_v18 }
 0x6ec   :  { %1011 = vst.msk [vmem:[#allocation3 + $0xc] sm:$0x1] %vm233_vm6, %v1007_v19 }
 0x758   :  { %v983_v20 = vpop.permute.xlu0 %982 }
 0x759   :  { %985 = vst.msk [vmem:[#allocation2] sm:$0x3] %vm207_vm7, %v983_v20 }
 0x75a   :  { %1099 = vst.msk [vmem:[#allocation2] sm:$0x3] %vm119_vm4, %v1097_v49 }
 0x761   :  { %v1100_v21 = vld [vmem:[#allocation2] sm:$0x3] }
 0x762   :  { %1823 = vmatmul.mubr.msk.f32.vlgmr.msra.gmra.mxu1 %vm128_vm5, %v1100_v21 }
 0x763   :  { %1831 = vmatpush3.msra.mxu1 %v1967_v2  ;;  %1834 = vmatprep.mubr.msk.f32.mxu1 %vm1907_vm0, %v1906_v0 }
 0x764   :  { %1832 = vmatprep.subr.mxu1 %v1906_v0 }
 0x765   :  { %1833 = vmatpush3.msra.mxu1 %v1974_v3 }
 0x766   :  { %1842 = vmatprep.subr.mxu1 %v1906_v0 }
 0x822   :  { %v1170_v22 = vpop.f32.mrf.mxu1 }
 0x823   :  { %v1171_v24 = vadd.f32 %v2007_v23, %v1170_v22 }
 0x824   :  { %v1824_v25 = vpop.f32.mrf.mxu1 }
 0x825   :  { %1896 = vtanh.f32 %v1171_v24 }
 0x832   :  { %v1897_v26 = vpop.eup %1896 }
 0x833   :  { %v1186_v27 = vrot.slane %v1897_v26, %v2010_v35  ;;  %1176 = vrot.lane.b32.xlu1 %v1897_v26, %s1909_s3 }
 0x835   :  { %v1187_v28 = vcombine.high %v1186_v27, %v1186_v27  ;;  %v1194_v29 = vrot.slane %v1186_v27, %v2010_v35 }
 0x837   :  { %v1201_v30 = vrot.slane %v1187_v28, %v2010_v35  ;;  %1204 = vst.msk [vmem:[#allocation3 + $0x5] sm:$0x1] %vm233_vm6, %v1194_v29 }
 0x839   :  { %1205 = vst.msk [vmem:[#allocation3 + $0xd] sm:$0x1] %vm233_vm6, %v1201_v30 }
 0x8a5   :  { %v1177_v31 = vpop.permute.xlu1 %1176 }
 0x8a6   :  { %1179 = vst.msk [vmem:[#allocation2] sm:$0x3] %vm207_vm7, %v1177_v31 }
 0x8a7   :  { %1293 = vst.msk [vmem:[#allocation2] sm:$0x3] %vm119_vm4, %v1291_v7 }
 0x8ae   :  { %v1294_v32 = vld [vmem:[#allocation2] sm:$0x3] }
 0x8af   :  { %1835 = vmatmul.mubr.msk.f32.vlgmr.msra.gmra.mxu1 %vm128_vm5, %v1294_v32 }
 0x8b0   :  { %1843 = vmatpush3.msra.mxu1 %v1967_v2  ;;  %1846 = vmatprep.mubr.msk.f32.mxu1 %vm1907_vm0, %v1906_v0 }
 0x8b1   :  { %1844 = vmatprep.subr.mxu1 %v1906_v0  ;;  %v1475_v0 = vrot.slane %v1470_v10, 1 }
 0x8b2   :  { %1845 = vmatpush3.msra.mxu1 %v1974_v3  ;;  %v1401_v3 = vld [vmem:[%s2212_s0 + $0xf] sm:$0x1] }
 0x8b3   :  { %v1479_v41 = vadd.f32 %v1475_v0, %v1401_v3 }
 0x96f   :  { %v1364_v33 = vpop.f32.mrf.mxu1 }
 0x970   :  { %v1365_v34 = vadd.f32 %v2007_v23, %v1364_v33 }
 0x971   :  { %v1836_v36 = vpop.f32.mrf.mxu1 }
 0x972   :  { %1898 = vtanh.f32 %v1365_v34 }
 0x973   :  { %1900 = vtanh.f32 %v1479_v41 }
 0x974   :  { %1902 = vtanh.f32 %v1478_v43 }
 0x97f   :  { %v1899_v37 = vpop.eup %1898 }
 0x980   :  { %v1380_v38 = vrot.slane %v1899_v37, %v2010_v35  ;;  %1370 = vrot.lane.b32.xlu0 %v1899_v37, %s1909_s3  ;;  %v1901_v44 = vpop.eup %1900 }
 0x981   :  { %v1484_v45 = vrot.slane %v1901_v44, 7  ;;  %v1903_v46 = vpop.eup %1902 }
 0x982   :  { %v1381_v39 = vcombine.high %v1380_v38, %v1380_v38  ;;  %v1388_v2 = vrot.slane %v1380_v38, %v2010_v35 }
 0x983   :  { %v1485_v48 = vsel %vm116_vm2, %v1484_v45, %v1903_v46 }
 0x984   :  { %v1395_v40 = vrot.slane %v1381_v39, %v2010_v35  ;;  %1398 = vst.msk [vmem:[#allocation3 + $0x6] sm:$0x1] %vm233_vm6, %v1388_v2 }
 0x986   :  { %1399 = vst.msk [vmem:[#allocation3 + $0xe] sm:$0x1] %vm233_vm6, %v1395_v40 }
 0x9f2   :  { %v1371_v47 = vpop.permute.xlu0 %1370 }
 0x9f3   :  { %1373 = vst.msk [vmem:[#allocation2] sm:$0x3] %vm207_vm7, %v1371_v47 }
 0x9f4   :  { %1487 = vst.msk [vmem:[#allocation2] sm:$0x3] %vm119_vm4, %v1485_v48 }
 0x9fb   :  { %v1488_v49 = vld [vmem:[#allocation2] sm:$0x3] }
 0x9fc   :  { %1847 = vmatmul.mubr.msk.f32.vlgmr.msra.gmra.mxu1 %vm128_vm5, %v1488_v49 }
 0xabc   :  { %v1558_v51 = vpop.f32.mrf.mxu1 }
 0xabd   :  { %v1559_v52 = vadd.f32 %v2007_v23, %v1558_v51 }
 0xabe   :  { %v1848_v53 = vpop.f32.mrf.mxu1 }
 0xabf   :  { %1904 = vtanh.f32 %v1559_v52 }
 0xacc   :  { %v1905_v54 = vpop.eup %1904 }
 0xacd   :  { %v1574_v55 = vrot.slane %v1905_v54, %v2010_v35  ;;  %1564 = vrot.lane.b32.xlu1 %v1905_v54, %s1909_s3 }
 0xacf   :  { %v1575_v56 = vcombine.high %v1574_v55, %v1574_v55  ;;  %v1582_v57 = vrot.slane %v1574_v55, %v2010_v35 }
 0xad1   :  { %v1589_v1 = vrot.slane %v1575_v56, %v2010_v35  ;;  %1592 = vst.msk [vmem:[#allocation3 + $0x7] sm:$0x1] %vm233_vm6, %v1582_v57 }
 0xad3   :  { %1593 = vst.msk [vmem:[#allocation3 + $0xf] sm:$0x1] %vm233_vm6, %v1589_v1 }
 0xad8   :  { %v1594_v58 = vld [vmem:[#allocation3] sm:$0xff] }
 0xad9   :  { %1851 = vmatprep.mubr.msk.f32.mxu0 %vm31_vm3, %v1594_v58 }
 0xada   :  { %v1595_v23 = vld [vmem:[#allocation3 + $0x8] sm:$0xff] }
 0xadb   :  { %1852 = vmatmul.mubr.msk.f32.vlgmr.msra.gmra.mxu0 %vm31_vm3, %v1595_v23 }
 0xb3f   :  { %v1565_v59 = vpop.permute.xlu1 %1564 }
 0xb40   :  { %1567 = vst.msk [vmem:[#allocation2] sm:$0x3] %vm207_vm7, %v1565_v59 }
 0xb9b   :  { %v1853_v61 = vpop.f32.mrf.mxu0 }
 0xb9c   :  { %v1682_v62 = vadd.f32 %v1853_v61, %v1707_v60 }
 0xb9d   :  { %v1676_v35 = vpop.f32.mrf.mxu0 }
 0xb9e   :  { %1686 = vst [vmem:[%s2216_s6 + $0x8] sm:$0xff] %v1682_v62  ;;  %v1677_v63 = vadd.f32 %v1707_v60, %v1676_v35 }
 0xba0   :  { %1685 = vst [vmem:[%s2216_s6] sm:$0xff] %v1677_v63 }

</bundles_post_ra>
